<compile_context>
chip_gen: v5e
topology: v5e:2x2
jax: 0.10.0
libtpu: 0.0.40
codegen_flags: <defaults>
</compile_context>

<pallas_src>
import jax
import jax.numpy as jnp
from jax import lax
from jax.experimental import pallas as pl
from jax.experimental.pallas import tpu as pltpu


def _round_up(a: int, b: int) -> int:
    return (a + b - 1) // b * b


def _cdiv(a: int, b: int) -> int:
    return (a + b - 1) // b


def _make_kernel(tb: int, tn: int, n_valid_last: int, grid_n: int):
    """Builds the kernel body. tb/tn/n_valid_last/grid_n are compile-time constants."""

    def _accum_block(x_ref, y_ref, m_ref, num_acc, len_acc, valid_cols):
        # Process the (tb, tn) tile 128 lanes at a time so the live vreg set stays small
        # (no full-tile f32 intermediates -> no spill traffic). Accumulators are carried
        # as values across the unrolled chunk loop: one scratch load/store per tile.
        nacc = num_acc[...]
        lacc = len_acc[...]
        n_chunks = (valid_cols + 127) // 128
        for j in range(n_chunks):
            lo = j * 128
            sl = slice(lo, lo + 128)
            x = x_ref[:, sl].astype(jnp.float32)
            y = y_ref[:, sl].astype(jnp.float32)
            keep = 1.0 - m_ref[:, sl].astype(jnp.float32)   # 1 = valid, 0 = masked
            # Stable BCE-with-logits:
            #   -(y*log(sig(x)) + (1-y)*log(1-sig(x))) == max(x,0) - x*y + log1p(exp(-|x|))
            term = jnp.maximum(x, 0.0) - x * y + jnp.log1p(jnp.exp(-jnp.abs(x)))
            n_valid = valid_cols - lo
            if n_valid < 128:
                # Ragged lane tail (no wrapper padding): out-of-bounds lanes hold garbage
                # VMEM, so select 0 for them (jnp.where also kills any NaN/Inf there).
                lane = lax.broadcasted_iota(jnp.int32, (tb, 128), 1)
                ok = lane < n_valid
                keep = jnp.where(ok, keep, 0.0)
                term = jnp.where(ok, term * keep, 0.0)
            else:
                term = term * keep
            nacc = nacc + term
            lacc = lacc + keep
        num_acc[...] = nacc
        len_acc[...] = lacc

    def kernel(x_ref, y_ref, m_ref, out_ref, num_acc, len_acc):
        k = pl.program_id(1)
        nk = pl.num_programs(1)

        @pl.when(k == 0)
        def _init():
            num_acc[...] = jnp.zeros_like(num_acc)
            len_acc[...] = jnp.zeros_like(len_acc)

        if n_valid_last == tn:
            # N divides the lane tile: every reduction block is full.
            _accum_block(x_ref, y_ref, m_ref, num_acc, len_acc, tn)
        else:
            @pl.when(k == nk - 1)
            def _tail_block():
                _accum_block(x_ref, y_ref, m_ref, num_acc, len_acc, n_valid_last)

            if grid_n > 1:
                @pl.when(k < nk - 1)
                def _full_block():
                    _accum_block(x_ref, y_ref, m_ref, num_acc, len_acc, tn)

        @pl.when(k == nk - 1)
        def _finalize():
            # Single XLU cross-lane reduce + exact divide, once per row block.
            total = jnp.sum(num_acc[...], axis=1, keepdims=True)     # (tb, 1)
            lengths = jnp.sum(len_acc[...], axis=1, keepdims=True)   # (tb, 1)
            # NOTE: a fully-masked row gives 0/0 = NaN, matching the torch reference.
            loss = total / lengths
            # Lane-dense (128-wide) unmasked store; extra lanes are negligible traffic.
            out_ref[...] = jnp.broadcast_to(loss, out_ref.shape).astype(out_ref.dtype)

    return kernel


def masked_bce_with_logits_loss(x, y, mask, reduce="mean", *, tb=None, tn=4096,
                                vmem_limit_bytes=48 * 1024 * 1024):
    """Pallas TPU implementation of MaskedBCEWithLogitsLoss.forward."""
    assert x.shape == y.shape == mask.shape
    B = x.shape[0]
    x2 = x.reshape(B, -1)                 # native dtype (bf16 stays bf16)
    y2 = y.reshape(B, -1)
    m2 = mask.reshape(B, -1)
    N = x2.shape[1]

    # Mask bandwidth policy: never widen it in the wrapper. bool -> int8 (1 byte/elem);
    # any other dtype is passed at its native width and cast inside the kernel.
    if m2.dtype == jnp.bool_:
        m2 = m2.astype(jnp.int8)

    # Lane tile: multiple of 128, no bigger than the lane-rounded row length.
    tn = max(128, min(_round_up(int(tn), 128), _round_up(N, 128)))
    grid_n = _cdiv(N, tn)
    n_valid_last = N - (grid_n - 1) * tn   # valid columns in the last reduction block

    # Sublane tile: multiple of 32 (legal tiling for f32/bf16/int8 alike). Prefer >=2 row
    # blocks so the 'parallel' B axis can shard across the two TensorCores on v7x.
    if tb is None:
        tb = 64 if B > 64 else 32
    tb = max(32, _round_up(int(tb), 32))
    grid_b = _cdiv(B, tb)
    # TODO(synk): for B <= tb on v7x one TensorCore idles; splitting N into per-core
    # partial (sum, length) outputs would recover it but needs extra combine plumbing.

    kernel = _make_kernel(tb, tn, n_valid_last, grid_n)

    per_row = pl.pallas_call(
        kernel,
        out_shape=jax.ShapeDtypeStruct((B, 128), jnp.float32),
        grid_spec=pltpu.PrefetchScalarGridSpec(
            num_scalar_prefetch=0,
            grid=(grid_b, grid_n),
            in_specs=[
                pl.BlockSpec((tb, tn), lambda i, k: (i, k)),
                pl.BlockSpec((tb, tn), lambda i, k: (i, k)),
                pl.BlockSpec((tb, tn), lambda i, k: (i, k)),
            ],
            out_specs=pl.BlockSpec((tb, 128), lambda i, k: (i, 0)),
            scratch_shapes=[
                pltpu.VMEM((tb, 128), jnp.float32),   # loss-term accumulator
                pltpu.VMEM((tb, 128), jnp.float32),   # lengths accumulator
            ],
        ),
        compiler_params=pltpu.CompilerParams(
            dimension_semantics=("parallel", "arbitrary"),
            vmem_limit_bytes=vmem_limit_bytes,
        ),
    )(x2, y2, m2)

    bce_loss = per_row[:, 0]                          # (B,)
    if reduce is not None:
        bce_loss = getattr(jnp, reduce)(bce_loss)     # e.g. 'mean'
    return bce_loss


def _reference(x, y, mask, reduce="mean"):
    # Pure-JAX reference mirroring the torch code.
    x = x.astype(jnp.float32)
    y = y.astype(jnp.float32)
    mask = mask.astype(jnp.float32)
    axes = tuple(range(1, x.ndim))
    lengths = jnp.sum(1.0 - mask, axis=axes)
    prob = jax.nn.sigmoid(x)
    loss = -jnp.sum(
        (y * jnp.log(prob) + (1.0 - y) * jnp.log(1.0 - prob)) * (1.0 - mask),
        axis=axes,
    ) / lengths
    if reduce is not None:
        loss = getattr(jnp, reduce)(loss)
    return loss


def _seq_mask(valid_lens, C, T, dtype):
    # Sequence-style mask (1 = padded timestep), broadcast over channels.
    t_idx = jnp.arange(T, dtype=jnp.int32)
    m = t_idx[None, None, :] >= valid_lens[:, None, None]
    return jnp.broadcast_to(m, (valid_lens.shape[0], C, T)).astype(dtype)


if __name__ == "__main__":
    key = jax.random.PRNGKey(0)

    # --- Case 1: tiny f32, f32 mask; block larger than both array dims (partial block) ----
    k1, k2, key = jax.random.split(key, 3)
    B, C, T = 2, 4, 16
    x = jax.random.normal(k1, (B, C, T), dtype=jnp.float32)
    y = jax.random.bernoulli(k2, 0.5, (B, C, T)).astype(jnp.float32)
    mask = _seq_mask(jnp.array([10, 14], dtype=jnp.int32), C, T, jnp.float32)
    out = jax.block_until_ready(masked_bce_with_logits_loss(x, y, mask))
    ref = _reference(x, y, mask)
    assert jnp.allclose(out, ref, rtol=1e-5, atol=1e-5), (out, ref)

    # --- Case 2: f32 + bool mask (int8 path), real 2x2 grid with ragged N and B tails -----
    k1, k2, key = jax.random.split(key, 3)
    B, C, T = 40, 4, 100                      # N = 400; tn=256 -> blocks of 256 + 144
    x = jax.random.normal(k1, (B, C, T), dtype=jnp.float32)
    y = jax.random.bernoulli(k2, 0.5, (B, C, T)).astype(jnp.float32)
    valid_lens = (10 + (jnp.arange(B, dtype=jnp.int32) * 7) % (T - 10)).astype(jnp.int32)
    mask = _seq_mask(valid_lens, C, T, jnp.bool_)
    out = jax.block_until_ready(
        masked_bce_with_logits_loss(x, y, mask, tb=32, tn=256)
    )
    ref = _reference(x, y, mask)
    assert jnp.allclose(out, ref, rtol=1e-5, atol=1e-5), (out, ref)

    # --- Case 3: bf16 inputs with a wider f32 mask passed at native width ------------------
    k1, k2, key = jax.random.split(key, 3)
    B, C, T = 3, 8, 300                       # N = 2400, single k block with a partial chunk
    x = jax.random.normal(k1, (B, C, T), dtype=jnp.float32).astype(jnp.bfloat16)
    y = jax.random.bernoulli(k2, 0.5, (B, C, T)).astype(jnp.bfloat16)
    valid_lens = jnp.array([120, 250, 300], dtype=jnp.int32)
    mask = _seq_mask(valid_lens, C, T, jnp.float32)
    out = jax.block_until_ready(masked_bce_with_logits_loss(x, y, mask))
    ref = _reference(x, y, mask)
    assert jnp.allclose(out, ref, rtol=2e-3, atol=2e-3), (out, ref)

    # --- Case 4: bf16 + bool mask, default tn=4096 with 2 reduction blocks (ragged tail) ---
    k1, k2, key = jax.random.split(key, 3)
    B, C, T = 16, 2, 3000                     # N = 6000 -> k blocks of 4096 + 1904
    x = jax.random.normal(k1, (B, C, T), dtype=jnp.float32).astype(jnp.bfloat16)
    y = jax.random.bernoulli(k2, 0.5, (B, C, T)).astype(jnp.bfloat16)
    valid_lens = (100 + (jnp.arange(B, dtype=jnp.int32) * 173) % (T - 100)).astype(jnp.int32)
    mask = _seq_mask(valid_lens, C, T, jnp.bool_)
    out = jax.block_until_ready(masked_bce_with_logits_loss(x, y, mask))
    ref = _reference(x, y, mask)
    assert jnp.allclose(out, ref, rtol=2e-3, atol=2e-3), (out, ref)

    print("KERNEL_OK")
</pallas_src>

<mosaic_0001>
module attributes {stable_mosaic.version = 11 : i64} {
  func.func @kernel(%arg0: i32, %arg1: i32, %arg2: memref<32x128xf32, #tpu.memory_space<vmem>>, %arg3: memref<32x128xf32, #tpu.memory_space<vmem>>, %arg4: memref<32x128xf32, #tpu.memory_space<vmem>>, %arg5: memref<32x128xf32, #tpu.memory_space<vmem>>, %arg6: memref<32x128xf32, #tpu.memory_space<vmem>>, %arg7: memref<32x128xf32, #tpu.memory_space<vmem>>) attributes {dimension_semantics = [#tpu.dimension_semantics<parallel>, #tpu.dimension_semantics<arbitrary>], iteration_bounds = array<i64: 1, 1>, scalar_prefetch = 0 : i64, scratch_operands = 2 : i64, tpu.core_type = #tpu.core_type<tc>, window_params = [{transform_indices = @transform_0, window_bounds = array<i64: 32, 128>}, {transform_indices = @transform_1, window_bounds = array<i64: 32, 128>}, {transform_indices = @transform_2, window_bounds = array<i64: 32, 128>}, {transform_indices = @transform_3, window_bounds = array<i64: 32, 128>}]} {
    %c0_i32 = arith.constant 0 : i32
    %0 = arith.cmpi eq, %arg1, %c0_i32 : i32
    %1 = arith.extui %0 : i1 to i32
    %c0_i32_0 = arith.constant 0 : i32
    %2 = arith.cmpi ne, %1, %c0_i32_0 : i32
    scf.if %2 {
      %cst = arith.constant 0.000000e+00 : f32
      %9 = vector.broadcast %cst : f32 to vector<32x128xf32>
      %c0 = arith.constant 0 : index
      %c0_5 = arith.constant 0 : index
      %10 = vector.load %arg6[%c0, %c0_5] : memref<32x128xf32, #tpu.memory_space<vmem>>, vector<32x128xf32>
      tpu.vector_store %arg6[%c0, %c0_5], %9 {strides = array<i32>} : memref<32x128xf32, #tpu.memory_space<vmem>>, vector<32x128xf32>,
      %cst_6 = arith.constant 0.000000e+00 : f32
      %11 = vector.broadcast %cst_6 : f32 to vector<32x128xf32>
      %c0_7 = arith.constant 0 : index
      %c0_8 = arith.constant 0 : index
      %12 = vector.load %arg7[%c0_7, %c0_8] : memref<32x128xf32, #tpu.memory_space<vmem>>, vector<32x128xf32>
      tpu.vector_store %arg7[%c0_7, %c0_8], %11 {strides = array<i32>} : memref<32x128xf32, #tpu.memory_space<vmem>>, vector<32x128xf32>,
    } else {
    }
    %c0_i32_1 = arith.constant 0 : i32
    %3 = arith.cmpi eq, %arg1, %c0_i32_1 : i32
    %4 = arith.extui %3 : i1 to i32
    %c0_i32_2 = arith.constant 0 : i32
    %5 = arith.cmpi ne, %4, %c0_i32_2 : i32
    scf.if %5 {
      %c0 = arith.constant 0 : index
      %c0_5 = arith.constant 0 : index
      %9 = vector.load %arg6[%c0, %c0_5] : memref<32x128xf32, #tpu.memory_space<vmem>>, vector<32x128xf32>
      %c0_6 = arith.constant 0 : index
      %c0_7 = arith.constant 0 : index
      %10 = vector.load %arg7[%c0_6, %c0_7] : memref<32x128xf32, #tpu.memory_space<vmem>>, vector<32x128xf32>
      %c0_8 = arith.constant 0 : index
      %c0_9 = arith.constant 0 : index
      %11 = vector.load %arg2[%c0_8, %c0_9] : memref<32x128xf32, #tpu.memory_space<vmem>>, vector<32x128xf32>
      %c0_10 = arith.constant 0 : index
      %c0_11 = arith.constant 0 : index
      %12 = vector.load %arg3[%c0_10, %c0_11] : memref<32x128xf32, #tpu.memory_space<vmem>>, vector<32x128xf32>
      %c0_12 = arith.constant 0 : index
      %c0_13 = arith.constant 0 : index
      %13 = vector.load %arg4[%c0_12, %c0_13] : memref<32x128xf32, #tpu.memory_space<vmem>>, vector<32x128xf32>
      %cst = arith.constant 1.000000e+00 : f32
      %14 = vector.broadcast %cst : f32 to vector<32x128xf32>
      %15 = arith.subf %14, %13 : vector<32x128xf32>
      %cst_14 = arith.constant 0.000000e+00 : f32
      %16 = vector.broadcast %cst_14 : f32 to vector<32x128xf32>
      %17 = arith.maximumf %11, %16 : vector<32x128xf32>
      %18 = arith.mulf %11, %12 : vector<32x128xf32>
      %19 = arith.subf %17, %18 : vector<32x128xf32>
      %20 = math.absf %11 : vector<32x128xf32>
      %cst_15 = arith.constant 0.000000e+00 : f32
      %21 = vector.broadcast %cst_15 : f32 to vector<32x128xf32>
      %22 = arith.subf %21, %20 : vector<32x128xf32>
      %23 = math.exp %22 : vector<32x128xf32>
      %24 = math.log1p %23 : vector<32x128xf32>
      %25 = arith.addf %19, %24 : vector<32x128xf32>
      %26 = tpu.iota {dimensions = array<i32: 1>} : vector<32x128xi32>
      %c64_i32 = arith.constant 64 : i32
      %27 = vector.broadcast %c64_i32 : i32 to vector<32x128xi32>
      %28 = arith.cmpi slt, %26, %27 : vector<32x128xi32>
      %cst_16 = arith.constant 0.000000e+00 : f32
      %29 = vector.broadcast %cst_16 : f32 to vector<32x128xf32>
      %30 = arith.select %28, %15, %29 : vector<32x128xi1>, vector<32x128xf32>
      %31 = arith.mulf %25, %30 : vector<32x128xf32>
      %cst_17 = arith.constant 0.000000e+00 : f32
      %32 = vector.broadcast %cst_17 : f32 to vector<32x128xf32>
      %33 = arith.select %28, %31, %32 : vector<32x128xi1>, vector<32x128xf32>
      %34 = arith.addf %9, %33 : vector<32x128xf32>
      %35 = arith.addf %10, %30 : vector<32x128xf32>
      %c0_18 = arith.constant 0 : index
      %c0_19 = arith.constant 0 : index
      %36 = vector.load %arg6[%c0_18, %c0_19] : memref<32x128xf32, #tpu.memory_space<vmem>>, vector<32x128xf32>
      tpu.vector_store %arg6[%c0_18, %c0_19], %34 {strides = array<i32>} : memref<32x128xf32, #tpu.memory_space<vmem>>, vector<32x128xf32>,
      %c0_20 = arith.constant 0 : index
      %c0_21 = arith.constant 0 : index
      %37 = vector.load %arg7[%c0_20, %c0_21] : memref<32x128xf32, #tpu.memory_space<vmem>>, vector<32x128xf32>
      tpu.vector_store %arg7[%c0_20, %c0_21], %35 {strides = array<i32>} : memref<32x128xf32, #tpu.memory_space<vmem>>, vector<32x128xf32>,
    } else {
    }
    %c0_i32_3 = arith.constant 0 : i32
    %6 = arith.cmpi eq, %arg1, %c0_i32_3 : i32
    %7 = arith.extui %6 : i1 to i32
    %c0_i32_4 = arith.constant 0 : i32
    %8 = arith.cmpi ne, %7, %c0_i32_4 : i32
    scf.if %8 {
      %c0 = arith.constant 0 : index
      %c0_5 = arith.constant 0 : index
      %9 = vector.load %arg6[%c0, %c0_5] : memref<32x128xf32, #tpu.memory_space<vmem>>, vector<32x128xf32>
      %cst = arith.constant dense<0.000000e+00> : vector<32xf32>
      %10 = vector.multi_reduction <add>, %9, %cst [1] : vector<32x128xf32> to vector<32xf32>
      %11 = vector.shape_cast %10 : vector<32xf32> to vector<32x1xf32>
      %c0_6 = arith.constant 0 : index
      %c0_7 = arith.constant 0 : index
      %12 = vector.load %arg7[%c0_6, %c0_7] : memref<32x128xf32, #tpu.memory_space<vmem>>, vector<32x128xf32>
      %cst_8 = arith.constant dense<0.000000e+00> : vector<32xf32>
      %13 = vector.multi_reduction <add>, %12, %cst_8 [1] : vector<32x128xf32> to vector<32xf32>
      %14 = vector.shape_cast %13 : vector<32xf32> to vector<32x1xf32>
      %15 = arith.divf %11, %14 : vector<32x1xf32>
      %16 = vector.shape_cast %15 : vector<32x1xf32> to vector<32x1xf32>
      %17 = vector.broadcast %16 : vector<32x1xf32> to vector<32x128xf32>
      %c0_9 = arith.constant 0 : index
      %c0_10 = arith.constant 0 : index
      %18 = vector.load %arg5[%c0_9, %c0_10] : memref<32x128xf32, #tpu.memory_space<vmem>>, vector<32x128xf32>
      tpu.vector_store %arg5[%c0_9, %c0_10], %17 {strides = array<i32>} : memref<32x128xf32, #tpu.memory_space<vmem>>, vector<32x128xf32>,
    } else {
    }
    return
  }
  func.func @transform_0(%arg0: i32, %arg1: i32) -> (i32, i32) {
    %c0_i32 = arith.constant 0 : i32
    return %arg0, %arg1 : i32, i32
  }
  func.func @transform_1(%arg0: i32, %arg1: i32) -> (i32, i32) {
    %c0_i32 = arith.constant 0 : i32
    return %arg0, %arg1 : i32, i32
  }
  func.func @transform_2(%arg0: i32, %arg1: i32) -> (i32, i32) {
    %c0_i32 = arith.constant 0 : i32
    return %arg0, %arg1 : i32, i32
  }
  func.func @transform_3(%arg0: i32, %arg1: i32) -> (i32, i32) {
    %c0_i32 = arith.constant 0 : i32
    %c0_i32_0 = arith.constant 0 : i32
    return %arg0, %c0_i32 : i32, i32
  }
}

</mosaic_0001>

<bundles_post_ra>
// kernel: tpu_custom_call.1
= control target key start
LH: loop header
LB: loop body
LE: loop exit
PB: predicated region body
PF: predicated region fallthrough
CT: control target
= control target key end

     0   :  { %8 = vsyncpa [#allocation5], 0  ;;  %s555_s0 = inlined_call_operand.hbm [shape: f32[2,64], index: 0, kind: input, shape index: {}]   ;;  %s556_s1 = inlined_call_operand.hbm [shape: f32[2,64], index: 1, kind: input, shape index: {}]   ;;  %s557_s2 = inlined_call_operand.hbm [shape: f32[2,64], index: 2, kind: input, shape index: {}]   ;;  %s558_s3 = inlined_call_operand.hbm [shape: f32[2,128], index: 3, kind: output, shape index: {}]  }
   0x1   :  { %9 = vsyncpa [#allocation8], 0 }
   0x2   :  { %10 = vsyncpa [#allocation6], 0 }
   0x3   :  { %14 = vsyncadd [#allocation5], 480  ;;  %s15_s14 = sshll.u32 %s555_s0, 4  ;;  %s437_s15 = smov [#allocation4]   ;;  %s16_s14 = int_to_ptr.hbm [resolvable:$true] %s15_s14 }
   0x4   :  { %s17_s16 = sshll.u32 %s437_s15, 4  ;;  %s438_s17 = smov 32   ;;  %s18_s16 = int_to_ptr.vmem [resolvable:$true] %s17_s16 }
   0x5   :  { %s439_s18 = smov 2  }
   0x6   :  { %23 = dma.hbm_to_vmem [thread:$0]  %s16_s14, 32, %s18_s16, [#allocation5], %s438_s17, %s438_s17, %s439_s18  }
   0x7   :  { %27 = vsyncadd [#allocation8], 480  ;;  %s28_s21 = sshll.u32 %s556_s1, 4  ;;  %s440_s22 = smov [#allocation7]   ;;  %s29_s21 = int_to_ptr.hbm [resolvable:$true] %s28_s21 }
   0x8   :  { %s30_s23 = sshll.u32 %s440_s22, 4  ;;  %s31_s23 = int_to_ptr.vmem [resolvable:$true] %s30_s23 }
   0x9   :  { %36 = dma.hbm_to_vmem [thread:$0]  %s29_s21, 32, %s31_s23, [#allocation8], %s438_s17, %s438_s17, %s439_s18  }
   0xa   :  { %40 = vsyncadd [#allocation8], 480  ;;  %s41_s25 = sshll.u32 %s557_s2, 4  ;;  %s441_s26 = smov [#allocation9]   ;;  %s42_s25 = int_to_ptr.hbm [resolvable:$true] %s41_s25 }
   0xb   :  { %s43_s27 = sshll.u32 %s441_s26, 4  ;;  %s44_s27 = int_to_ptr.vmem [resolvable:$true] %s43_s27 }
   0xc   :  { %49 = dma.hbm_to_vmem [thread:$0]  %s42_s25, 32, %s44_s27, [#allocation8], %s438_s17, %s438_s17, %s439_s18  }
   0xd   :  { %431 = dma.done.wait [#allocation5], 512  }
   0xe   :  { %432 = vsyncadd [#allocation5], 4294966784 }
   0xf   :  { %433 = dma.done.wait [#allocation8], 1024  }
  0x10   :  { %434 = vsyncadd [#allocation8], 4294966272  ;;  %v166_v0 = vlaneseq  ;;  %v92_v2 = vld [vmem:[#allocation9 + $0x10] sm:$0xff]  ;;  %v90_v6 = vld [vmem:[#allocation9] sm:$0xff] }
  0x11   :  { %v84_v3 = vld [vmem:[#allocation4 + $0x10] sm:$0xff]  ;;  %v96_v4 = vsub.f32 1.0, %v92_v2  ;;  %v484_v7 = vld [vmem:[#allocation4] sm:$0xff]  ;;  %v94_v8 = vsub.f32 1.0, %v90_v6  ;;  %v93_v10 = vld [vmem:[#allocation9 + $0x18] sm:$0xff] }
  0x12   :  { %v481_v1 = vand.u32 127, %v166_v0  ;;  %v112_v5 = vand.u32 2147483647, %v84_v3  ;;  %v110_v9 = vand.u32 2147483647, %v484_v7  ;;  %v491_v13 = vld [vmem:[#allocation4 + $0x18] sm:$0xff] }
  0x13   :  { %v91_v14 = vld [vmem:[#allocation9 + $0x8] sm:$0xff]  ;;  %v97_v18 = vsub.f32 1.0, %v93_v10  ;;  %v113_v19 = vand.u32 2147483647, %v491_v13  ;;  %v88_v31 = vld [vmem:[#allocation7 + $0x10] sm:$0xff]  ;;  %v100_v37 = vmax.f32 %v84_v3, 0.0 }
  0x14   :  { %vm168_vm0 = vcmp.lt.s32.totalorder %v481_v1, 64  ;;  %v116_v12 = vsub.f32 0.0, %v112_v5  ;;  %v114_v16 = vsub.f32 0.0, %v110_v9  ;;  %v500_v20 = vld [vmem:[#allocation4 + $0x8] sm:$0xff]  ;;  %v95_v22 = vsub.f32 1.0, %v91_v14  ;;  %v86_v39 = vld [vmem:[#allocation7] sm:$0xff] }
  0x15   :  { %v489_v11 = vsel %vm168_vm0, %v96_v4, 0.0  ;;  %v496_v15 = vsel %vm168_vm0, %v94_v8, 0.0  ;;  %v117_v23 = vsub.f32 0.0, %v113_v19  ;;  %v111_v24 = vand.u32 2147483647, %v500_v20  ;;  %v89_v49 = vld [vmem:[#allocation7 + $0x18] sm:$0xff] }
  0x16   :  { %217 = vadd.xlane.f32.xlu1 %v489_v11  ;;  %v122_v17 = vmul.f32 1.442695, %v116_v12  ;;  %213 = vadd.xlane.f32.xlu0 %v496_v15  ;;  %v118_v21 = vmul.f32 1.442695, %v114_v16  ;;  %v505_v25 = vsel %vm168_vm0, %v97_v18, 0.0  ;;  %v509_v27 = vsel %vm168_vm0, %v95_v22, 0.0 }
  0x17   :  { %v124_v26 = vmul.f32 1.442695, %v117_v23  ;;  %v115_v28 = vsub.f32 0.0, %v111_v24  ;;  %v104_v38 = vmul.f32 %v88_v31, %v84_v3  ;;  %v98_v46 = vmax.f32 %v484_v7, 0.0  ;;  %v87_v62 = vld [vmem:[#allocation7 + $0x8] sm:$0xff] }
  0x18   :  { %311 = vpow2.f32 %v122_v17  ;;  %v102_v47 = vmul.f32 %v86_v39, %v484_v7  ;;  %v101_v52 = vmax.f32 %v491_v13, 0.0  ;;  %v105_v60 = vmul.f32 %v89_v49, %v491_v13 }
  0x19   :  { %313 = vpow2.f32 %v118_v21  ;;  %v120_v29 = vmul.f32 1.442695, %v115_v28  ;;  %v108_v51 = vsub.f32 %v100_v37, %v104_v38  ;;  %v99_v4 = vmax.f32 %v500_v20, 0.0 }
  0x1a   :  { %315 = vpow2.f32 %v124_v26  ;;  %v106_v2 = vsub.f32 %v98_v46, %v102_v47  ;;  %v103_v8 = vmul.f32 %v87_v62, %v500_v20  ;;  %v109_v14 = vsub.f32 %v101_v52, %v105_v60 }
  0x1b   :  { %317 = vpow2.f32 %v120_v29 }
  0x1c   :  { %v107_v24 = vsub.f32 %v99_v4, %v103_v8 }
  0x1e   :  { %219 = vadd.xlane.f32.xlu1 %v505_v25  ;;  %v312_v30 = vpop.eup %311  ;;  %215 = vadd.xlane.f32.xlu0 %v509_v27 }
  0x1f   :  { %v314_v32 = vpop.eup %313  ;;  %v144_v33 = vadd.f32 1.0, %v312_v30  ;;  %v147_v34 = vmul.f32 -0.5, %v312_v30  ;;  %v150_v42 = vand.u32 2147483647, %v312_v30 }
  0x20   :  { %v126_v35 = vadd.f32 1.0, %v314_v32  ;;  %v129_v36 = vmul.f32 -0.5, %v314_v32  ;;  %v316_v40 = vpop.eup %315  ;;  %v132_v48 = vand.u32 2147483647, %v314_v32 }
  0x21   :  { %319 = vlog2.f32 %v144_v33  ;;  %v148_v41 = vadd.f32 1.0, %v147_v34  ;;  %v153_v44 = vadd.f32 1.0, %v316_v40  ;;  %v156_v45 = vmul.f32 -0.5, %v316_v40  ;;  %v318_v50 = vpop.eup %317 }
  0x22   :  { %321 = vlog2.f32 %v126_v35  ;;  %v130_v43 = vadd.f32 1.0, %v129_v36  ;;  %v135_v55 = vadd.f32 1.0, %v318_v50  ;;  %v138_v56 = vmul.f32 -0.5, %v318_v50 }
  0x23   :  { %323 = vlog2.f32 %v153_v44  ;;  %v149_v53 = vmul.f32 %v312_v30, %v148_v41  ;;  %v157_v54 = vadd.f32 1.0, %v156_v45  ;;  %vm516_vm1 = vcmp.lt.f32.partialorder %v150_v42, 0.0004427343 }
  0x24   :  { %v131_v59 = vmul.f32 %v314_v32, %v130_v43  ;;  %v159_v61 = vand.u32 2147483647, %v316_v40  ;;  %vm133_vm2 = vcmp.lt.f32.partialorder %v132_v48, 0.0004427343  ;;  %325 = vlog2.f32 %v135_v55 }
  0x25   :  { %v139_v5 = vadd.f32 1.0, %v138_v56  ;;  %v158_v7 = vmul.f32 %v316_v40, %v157_v54  ;;  %v141_v9 = vand.u32 2147483647, %v318_v50 }
  0x26   :  { %vm160_vm3 = vcmp.lt.f32.partialorder %v159_v61, 0.0004427343 }
  0x27   :  { %v320_v57 = vpop.eup %319  ;;  %v140_v19 = vmul.f32 %v318_v50, %v139_v5  ;;  %vm142_vm4 = vcmp.lt.f32.partialorder %v141_v9, 0.0004427343 }
  0x28   :  { %v322_v63 = vpop.eup %321  ;;  %v146_v0 = vmul.f32 0.6931472, %v320_v57 }
  0x29   :  { %v128_v3 = vmul.f32 0.6931472, %v322_v63  ;;  %v324_v10 = vpop.eup %323 }
  0x2a   :  { %v152_v6 = vsel %vm516_vm1, %v149_v53, %v146_v0  ;;  %v155_v17 = vmul.f32 0.6931472, %v324_v10  ;;  %v326_v21 = vpop.eup %325 }
  0x2b   :  { %v164_v12 = vadd.f32 %v152_v6, %v108_v51  ;;  %v134_v13 = vsel %vm133_vm2, %v131_v59, %v128_v3  ;;  %v137_v28 = vmul.f32 0.6931472, %v326_v21 }
  0x2c   :  { %v162_v16 = vadd.f32 %v134_v13, %v106_v2  ;;  %v161_v23 = vsel %vm160_vm3, %v158_v7, %v155_v17 }
  0x2d   :  { %v175_v18 = vmul.f32 %v489_v11, %v164_v12  ;;  %v165_v26 = vadd.f32 %v161_v23, %v109_v14  ;;  %v143_v31 = vsel %vm142_vm4, %v140_v19, %v137_v28 }
  0x2e   :  { %v173_v22 = vmul.f32 %v496_v15, %v162_v16  ;;  %v163_v11 = vadd.f32 %v143_v31, %v107_v24 }
  0x2f   :  { %v179_v20 = vsel %vm168_vm0, %v175_v18, 0.0  ;;  %v176_v30 = vmul.f32 %v505_v25, %v165_v26 }
  0x30   :  { %205 = vadd.xlane.f32.xlu0 %v179_v20  ;;  %v177_v29 = vsel %vm168_vm0, %v173_v22, 0.0  ;;  %v174_v32 = vmul.f32 %v509_v27, %v163_v11 }
  0x31   :  { %201 = vadd.xlane.f32.xlu2 %v177_v29  ;;  %v180_v15 = vsel %vm168_vm0, %v176_v30, 0.0 }
  0x32   :  { %207 = vadd.xlane.f32.xlu1 %v180_v15  ;;  %v178_v33 = vsel %vm168_vm0, %v174_v32, 0.0 }
  0x39   :  { %203 = vadd.xlane.f32.xlu2 %v178_v33 }
  0x89   :  { %v218_v34 = vpop.xlane.xlu1 %217  ;;  %v214_v35 = vpop.xlane.xlu0 %213 }
  0x8a   :  { %327 = vrcp.f32 %v218_v34  ;;  %vm256_vm5 = vweird.f32 %v218_v34  ;;  %v262_v50 = vand.u32 2147483648, %v218_v34  ;;  %vm226_vm7 = vweird.f32 %v214_v35 }
  0x8b   :  { %329 = vrcp.f32 %v214_v35  ;;  %v260_v53 = vand.u32 2147483647, %v218_v34  ;;  %v232_v54 = vand.u32 2147483648, %v214_v35  ;;  %v230_v56 = vand.u32 2147483647, %v214_v35 }
  0x8c   :  { %v263_v60 = vor.u32 1.1754944e-38, %v262_v50 }
  0x8d   :  { %vm261_vm13 = vcmp.eq.f32.partialorder %v260_v53, 8.507059e+37  ;;  %v233_v0 = vor.u32 1.1754944e-38, %v232_v54  ;;  %vm231_vm15 = vcmp.eq.f32.partialorder %v230_v56, 8.507059e+37 }
  0x90   :  { %v328_v36 = vpop.eup %327 }
  0x91   :  { %v330_v37 = vpop.eup %329  ;;  %v252_v25 = vmul.f32 %v328_v36, %v218_v34  ;;  %v220_v38 = vpop.xlane.xlu1 %219  ;;  %vm257_vm6 = vweird.f32 %v328_v36 }
  0x92   :  { %v222_v39 = vmul.f32 %v330_v37, %v214_v35  ;;  %331 = vrcp.f32 %v220_v38  ;;  %v216_v40 = vpop.xlane.xlu0 %215  ;;  %vm227_vm8 = vweird.f32 %v330_v37  ;;  %vm537_vm9 = vmor %vm256_vm5, %vm257_vm6  ;;  %vm271_vm10 = vweird.f32 %v220_v38 }
  0x93   :  { %333 = vrcp.f32 %v216_v40  ;;  %v253_v41 = vsub.f32 1.0, %v252_v25  ;;  %vm228_vm12 = vmor %vm226_vm7, %vm227_vm8  ;;  %v277_v59 = vand.u32 2147483648, %v220_v38  ;;  %v275_v63 = vand.u32 2147483647, %v220_v38 }
  0x94   :  { %v223_v42 = vsub.f32 1.0, %v222_v39  ;;  %vm241_vm0 = vweird.f32 %v216_v40  ;;  %v247_v13 = vand.u32 2147483648, %v216_v40  ;;  %v245_v17 = vand.u32 2147483647, %v216_v40 }
  0x95   :  { %v254_v1 = vmul.f32 %v328_v36, %v253_v41  ;;  %v278_v9 = vor.u32 1.1754944e-38, %v277_v59  ;;  %vm276_vm2 = vcmp.eq.f32.partialorder %v275_v63, 8.507059e+37 }
  0x96   :  { %v224_v46 = vmul.f32 %v330_v37, %v223_v42  ;;  %v248_v21 = vor.u32 1.1754944e-38, %v247_v13  ;;  %vm246_vm4 = vcmp.eq.f32.partialorder %v245_v17, 8.507059e+37 }
  0x97   :  { %v255_v49 = vadd.f32 %v328_v36, %v254_v1 }
  0x98   :  { %v332_v27 = vpop.eup %331  ;;  %v225_v52 = vadd.f32 %v330_v37, %v224_v46 }
  0x99   :  { %v334_v43 = vpop.eup %333  ;;  %v267_v44 = vmul.f32 %v332_v27, %v220_v38  ;;  %vm272_vm11 = vweird.f32 %v332_v27  ;;  %v259_v58 = vsel %vm537_vm9, %v328_v36, %v255_v49 }
  0x9a   :  { %v237_v45 = vmul.f32 %v334_v43, %v216_v40  ;;  %v229_v61 = vsel %vm228_vm12, %v330_v37, %v225_v52  ;;  %vm543_vm14 = vmor %vm271_vm10, %vm272_vm11  ;;  %v264_v3 = vsel %vm261_vm13, %v263_v60, %v259_v58  ;;  %vm242_vm1 = vweird.f32 %v334_v43 }
  0x9b   :  { %v268_v47 = vsub.f32 1.0, %v267_v44  ;;  %v234_v7 = vsel %vm231_vm15, %v233_v0, %v229_v61  ;;  %vm243_vm3 = vmor %vm241_vm0, %vm242_vm1 }
  0x9c   :  { %v238_v51 = vsub.f32 1.0, %v237_v45 }
  0x9d   :  { %v269_v48 = vmul.f32 %v332_v27, %v268_v47 }
  0x9e   :  { %v239_v62 = vmul.f32 %v334_v43, %v238_v51 }
  0x9f   :  { %v270_v57 = vadd.f32 %v332_v27, %v269_v48 }
  0xa0   :  { %v240_v12 = vadd.f32 %v334_v43, %v239_v62 }
  0xa1   :  { %v274_v5 = vsel %vm543_vm14, %v332_v27, %v270_v57 }
  0xa2   :  { %v279_v14 = vsel %vm276_vm2, %v278_v9, %v274_v5  ;;  %v244_v19 = vsel %vm243_vm3, %v334_v43, %v240_v12 }
  0xa3   :  { %v206_v4 = vpop.xlane.xlu0 %205  ;;  %v249_v22 = vsel %vm246_vm4, %v248_v21, %v244_v19 }
  0xa4   :  { %v265_v6 = vmul.f32 %v264_v3, %v206_v4  ;;  %v202_v8 = vpop.xlane.xlu2 %201 }
  0xa5   :  { %v235_v10 = vmul.f32 %v234_v7, %v202_v8  ;;  %v208_v16 = vpop.xlane.xlu1 %207 }
  0xa6   :  { %283 = vst [vmem:[#allocation10 + $0x10] sm:$0xff] %v265_v6  ;;  %v280_v18 = vmul.f32 %v279_v14, %v208_v16 }
  0xa7   :  { %281 = vst [vmem:[#allocation10] sm:$0xff] %v235_v10 }
  0xa8   :  { %284 = vst [vmem:[#allocation10 + $0x18] sm:$0xff] %v280_v18 }
  0xac   :  { %v204_v23 = vpop.xlane.xlu2 %203 }
  0xad   :  { %v250_v24 = vmul.f32 %v249_v22, %v204_v23 }
  0xaf   :  { %282 = vst [vmem:[#allocation10 + $0x8] sm:$0xff] %v250_v24 }
  0xb0   :  { %288 = vsyncadd [#allocation6], 480  ;;  %s291_s28 = sshll.u32 %s558_s3, 4  ;;  %s442_s29 = smov [#allocation10]   ;;  %s292_s28 = int_to_ptr.hbm [resolvable:$true] %s291_s28 }
  0xb1   :  { %s289_s30 = sshll.u32 %s442_s29, 4  ;;  %s290_s30 = int_to_ptr.vmem [resolvable:$true] %s289_s30 }
  0xb2   :  { %297 = dma.vmem_to_hbm [thread:$0]  %s290_s30, 32, %s292_s28, [#allocation6], %s438_s17, %s438_s17, %s439_s18  }
  0xb3   :  { %435 = dma.done.wait [#allocation6], 512  }
  0xb4   :  { %436 = vsyncadd [#allocation6], 4294966784 }
  0xb5   :  { %302 = vsyncpa [#allocation5], 1 }
  0xb6   :  { %303 = vsyncpa [#allocation8], 1 }
  0xb7   :  { %304 = vsyncpa [#allocation6], 1 }

</bundles_post_ra>
